<compile_context>
chip_gen: v7x
topology: tpu7x:2x2x1
jax: 0.10.0
libtpu: 0.0.40
codegen_flags: <defaults>
</compile_context>

<pallas_src>
import jax
import jax.numpy as jnp
from jax import lax
from jax.experimental import pallas as pl
from jax.experimental.pallas import tpu as pltpu

VOCAB = 64
HIDDEN = 32
GROUP = 4                      # tokens packed per 128-lane output row (4 * 32 = 128)
LANES = GROUP * HIDDEN         # 128 (lane-dense output width)
KDIM = GROUP * VOCAB           # 256 (combined one-hot contraction width)
PAD_IDX = 0
LN_EPS = 1e-5                  # PyTorch nn.LayerNorm default
MAX_TR = 128                   # max output rows per grid step (= 512 tokens)


def gather_lut_kernel(ids_ref, lut_ref, o_ref):
    """out[r, 32*j:32*(j+1)] = LUT[ids[r, j], :]  via one combined one-hot matmul.

    ids_ref : (TR, GROUP)          int32  token ids, GROUP tokens per output row
    lut_ref : (GROUP*VOCAB, 128)   f32    block-diagonal folded LUT (VMEM resident)
    o_ref   : (TR, 128)            f32    lane-dense packed output (no pad lanes)
    """
    tr = ids_ref.shape[0]
    ids = ids_ref[...]                                          # (TR, GROUP)
    kiota = lax.broadcasted_iota(jnp.int32, (tr, KDIM), 1)      # (TR, 256)
    # Combined one-hot: column block j selects LUT rows [j*VOCAB, (j+1)*VOCAB).
    mask = kiota == ids[:, 0:1]
    for j in range(1, GROUP):                                   # static unroll
        mask = mask | (kiota == (ids[:, j:j + 1] + j * VOCAB))
    onehot = mask.astype(jnp.float32)
    o_ref[...] = jnp.dot(onehot, lut_ref[...],
                         preferred_element_type=jnp.float32).astype(o_ref.dtype)


def fused_forward_rows(ids_rows, lut4, tr):
    """ids_rows: (rows, GROUP) int32 -> (rows, 128) f32 packed output."""
    rows = ids_rows.shape[0]
    assert rows % tr == 0
    return pl.pallas_call(
        gather_lut_kernel,
        out_shape=jax.ShapeDtypeStruct((rows, LANES), jnp.float32),
        grid_spec=pltpu.PrefetchScalarGridSpec(
            num_scalar_prefetch=0,
            grid=(rows // tr,),
            in_specs=[
                pl.BlockSpec((tr, GROUP), lambda i: (i, 0)),     # token-id tile
                pl.BlockSpec((KDIM, LANES), lambda i: (0, 0)),   # folded LUT (resident)
            ],
            out_specs=pl.BlockSpec((tr, LANES), lambda i: (i, 0)),
        ),
        compiler_params=pltpu.CompilerParams(
            dimension_semantics=("parallel",)),                  # shards across v7x's 2 TCs
    )(ids_rows, lut4)


def init_params(key):
    """Deterministic init matching TorchModel._init_weights."""
    k_emb, k_lin = jax.random.split(key)
    # nn.Embedding: normal(0, 0.02), padding_idx row zeroed
    emb = 0.02 * jax.random.normal(k_emb, (VOCAB, HIDDEN), jnp.float32)
    emb = emb.at[PAD_IDX].set(0.0)
    # nn.Linear: weight normal(0, 0.02), bias zero
    lin_w = 0.02 * jax.random.normal(k_lin, (HIDDEN, HIDDEN), jnp.float32)
    lin_b = jnp.zeros((HIDDEN,), jnp.float32)
    # nn.LayerNorm: weight 1, bias 0
    ln_g = jnp.ones((HIDDEN,), jnp.float32)
    ln_b = jnp.zeros((HIDDEN,), jnp.float32)
    return dict(emb=emb, lin_w=lin_w, lin_b=lin_b, ln_g=ln_g, ln_b=ln_b)


def pack_params(params):
    """Fold Linear + LayerNorm into a per-vocab LUT at pack time (done once)."""
    table = params["emb"] @ params["lin_w"] + params["lin_b"]      # (VOCAB, HIDDEN)
    mu = table.mean(-1, keepdims=True)
    var = ((table - mu) ** 2).mean(-1, keepdims=True)
    lut = (table - mu) / jnp.sqrt(var + LN_EPS) * params["ln_g"] + params["ln_b"]
    # Block-diagonal layout so GROUP tokens pack into one 128-lane output row.
    lut4 = jnp.zeros((KDIM, LANES), jnp.float32)
    for j in range(GROUP):
        lut4 = lut4.at[j * VOCAB:(j + 1) * VOCAB,
                       j * HIDDEN:(j + 1) * HIDDEN].set(lut)
    return dict(lut4=lut4)


def forward(packed, ids):
    """TorchModel.__call__ equivalent: forward + (identity) postprocess -> dict."""
    b, s = ids.shape
    n = b * s
    n_rows = -(-n // GROUP)                       # output rows needed (4 tokens/row)
    rows8 = ((n_rows + 7) // 8) * 8               # sublane-align
    if rows8 <= 8:
        tr = rows8                                # tiny case: one 8-row step
    else:
        # >= 2 grid steps so both v7x TensorCores get work; cap per-step rows.
        half = ((rows8 // 2 + 7) // 8) * 8
        tr = min(MAX_TR, half)
    rows_pad = ((rows8 + tr - 1) // tr) * tr
    n_pad = rows_pad * GROUP

    ids_flat = ids.reshape(-1).astype(jnp.int32)
    if n_pad != n:                                 # static-shape Python branch
        ids_flat = jnp.pad(ids_flat, (0, n_pad - n), constant_values=PAD_IDX)
    ids_rows = ids_flat.reshape(rows_pad, GROUP)

    y = fused_forward_rows(ids_rows, packed["lut4"], tr)          # (rows_pad, 128)
    y = y.reshape(n_pad, HIDDEN)    # free: (rows,128) row-major == (rows*4, 32)
    if n_pad != n:
        y = y[:n]
    return {"last_hidden_state": y.reshape(b, s, HIDDEN)}


# TODO(synk): the base class forward() raises NotImplementedError; the concrete
# forward above is the minimal one implied by _init_weights (Embedding/Linear/LayerNorm).

if __name__ == "__main__":
    key = jax.random.PRNGKey(0)
    k_ids, k_params = jax.random.split(key)
    B, S = 2, 8
    ids = jax.random.randint(k_ids, (B, S), 0, VOCAB, dtype=jnp.int32)
    params = init_params(k_params)
    packed = pack_params(params)

    out = forward(packed, ids)
    jax.block_until_ready(out["last_hidden_state"])

    # sanity check against pure-JAX reference (unfolded math)
    x_ref = jnp.take(params["emb"], ids.reshape(-1), axis=0)
    y_ref = x_ref @ params["lin_w"] + params["lin_b"]
    mu = y_ref.mean(-1, keepdims=True)
    var = ((y_ref - mu) ** 2).mean(-1, keepdims=True)
    y_ref = (y_ref - mu) / jnp.sqrt(var + LN_EPS) * params["ln_g"] + params["ln_b"]
    assert jnp.allclose(out["last_hidden_state"].reshape(-1, HIDDEN), y_ref,
                        atol=1e-5, rtol=1e-5)
    print("KERNEL_OK")
</pallas_src>

<mosaic_0001>
module attributes {stable_mosaic.version = 11 : i64} {
  func.func @gather_lut_kernel(%arg0: i32, %arg1: memref<8x4xi32, #tpu.memory_space<vmem>>, %arg2: memref<256x128xf32, #tpu.memory_space<vmem>>, %arg3: memref<8x128xf32, #tpu.memory_space<vmem>>) attributes {dimension_semantics = [#tpu.dimension_semantics<parallel>], iteration_bounds = array<i64: 1>, scalar_prefetch = 0 : i64, scratch_operands = 0 : i64, tpu.core_type = #tpu.core_type<tc>, window_params = [{transform_indices = @transform_0, window_bounds = array<i64: 8, 4>}, {pipeline_mode = #tpu.pipeline_mode<synchronous>, transform_indices = @transform_1, window_bounds = array<i64: 256, 128>}, {transform_indices = @transform_2, window_bounds = array<i64: 8, 128>}]} {
    %c0 = arith.constant 0 : index
    %c0_0 = arith.constant 0 : index
    %0 = vector.load %arg1[%c0, %c0_0] : memref<8x4xi32, #tpu.memory_space<vmem>>, vector<8x4xi32>
    %1 = tpu.iota {dimensions = array<i32: 1>} : vector<8x256xi32>
    %2 = vector.extract_strided_slice %0 {offsets = [0, 0], sizes = [8, 1], strides = [1, 1]} : vector<8x4xi32> to vector<8x1xi32>
    %3 = vector.broadcast %2 : vector<8x1xi32> to vector<8x256xi32>
    %4 = arith.cmpi eq, %1, %3 : vector<8x256xi32>
    %5 = vector.extract_strided_slice %0 {offsets = [0, 1], sizes = [8, 1], strides = [1, 1]} : vector<8x4xi32> to vector<8x1xi32>
    %c64_i32 = arith.constant 64 : i32
    %6 = vector.broadcast %c64_i32 : i32 to vector<8x1xi32>
    %7 = arith.addi %5, %6 : vector<8x1xi32>
    %8 = vector.broadcast %7 : vector<8x1xi32> to vector<8x256xi32>
    %9 = arith.cmpi eq, %1, %8 : vector<8x256xi32>
    %10 = arith.ori %4, %9 : vector<8x256xi1>
    %11 = vector.extract_strided_slice %0 {offsets = [0, 2], sizes = [8, 1], strides = [1, 1]} : vector<8x4xi32> to vector<8x1xi32>
    %c128_i32 = arith.constant 128 : i32
    %12 = vector.broadcast %c128_i32 : i32 to vector<8x1xi32>
    %13 = arith.addi %11, %12 : vector<8x1xi32>
    %14 = vector.broadcast %13 : vector<8x1xi32> to vector<8x256xi32>
    %15 = arith.cmpi eq, %1, %14 : vector<8x256xi32>
    %16 = arith.ori %10, %15 : vector<8x256xi1>
    %17 = vector.extract_strided_slice %0 {offsets = [0, 3], sizes = [8, 1], strides = [1, 1]} : vector<8x4xi32> to vector<8x1xi32>
    %c192_i32 = arith.constant 192 : i32
    %18 = vector.broadcast %c192_i32 : i32 to vector<8x1xi32>
    %19 = arith.addi %17, %18 : vector<8x1xi32>
    %20 = vector.broadcast %19 : vector<8x1xi32> to vector<8x256xi32>
    %21 = arith.cmpi eq, %1, %20 : vector<8x256xi32>
    %22 = arith.ori %16, %21 : vector<8x256xi1>
    %23 = arith.extui %22 : vector<8x256xi1> to vector<8x256xi32>
    %24 = arith.sitofp %23 : vector<8x256xi32> to vector<8x256xf32>
    %c0_1 = arith.constant 0 : index
    %c0_2 = arith.constant 0 : index
    %25 = vector.load %arg2[%c0_1, %c0_2] : memref<256x128xf32, #tpu.memory_space<vmem>>, vector<256x128xf32>
    %cst = arith.constant dense<0.000000e+00> : vector<8x128xf32>
    %26 = tpu.matmul %24, %25, %cst {dimension_numbers = #tpu.dot_dimension_numbers<[1], [0], [0], [1], [0, 0, 1, 1], [], []>} : vector<8x256xf32>, vector<256x128xf32>, vector<8x128xf32> -> vector<8x128xf32>
    %c0_3 = arith.constant 0 : index
    %c0_4 = arith.constant 0 : index
    %27 = vector.load %arg3[%c0_3, %c0_4] : memref<8x128xf32, #tpu.memory_space<vmem>>, vector<8x128xf32>
    tpu.vector_store %arg3[%c0_3, %c0_4], %26 {strides = array<i32>} : memref<8x128xf32, #tpu.memory_space<vmem>>, vector<8x128xf32>,
    return
  }
  func.func @transform_0(%arg0: i32) -> (i32, i32) {
    %c0_i32 = arith.constant 0 : i32
    %c0_i32_0 = arith.constant 0 : i32
    return %arg0, %c0_i32 : i32, i32
  }
  func.func @transform_1(%arg0: i32) -> (i32, i32) {
    %c0_i32 = arith.constant 0 : i32
    %c0_i32_0 = arith.constant 0 : i32
    %c0_i32_1 = arith.constant 0 : i32
    return %c0_i32, %c0_i32_0 : i32, i32
  }
  func.func @transform_2(%arg0: i32) -> (i32, i32) {
    %c0_i32 = arith.constant 0 : i32
    %c0_i32_0 = arith.constant 0 : i32
    return %arg0, %c0_i32 : i32, i32
  }
}

</mosaic_0001>

<bundles_post_ra>
// kernel: tpu_custom_call.1
= control target key start
LH: loop header
LB: loop body
LE: loop exit
PB: predicated region body
PF: predicated region fallthrough
CT: control target
= control target key end

     0   :  { %7 = vsyncpa [#allocation3], 0  ;;  %s365_s0 = inlined_call_operand.vmem [shape: s32[8,4], index: 0, kind: input, shape index: {}]   ;;  %s366_s1 = inlined_call_operand.hbm [shape: f32[256,128], index: 1, kind: input, shape index: {}]   ;;  %s367_s2 = inlined_call_operand.hbm [shape: f32[8,128], index: 2, kind: output, shape index: {}]  }
   0x1   :  { %8 = vsyncpa [#allocation4], 0  ;;  %s314_s9 = smov [#allocation2]   ;;  %s266_s13 = scalar_lea.hbm %s366_s1, 4096 }
   0x2   :  { %s16_s10 = sshll.u32 %s314_s9, 4  ;;  %p267_p0 = scmp.ne.s32.totalorder %s366_s1, %s266_s13  ;;  %s17_s10 = int_to_ptr.vmem [resolvable:$true] %s16_s10 }
   0x3   :  { %p270_p1 = scmp.lt.u32.totalorder %s266_s13, %s366_s1 }
   0x5   :  { %p272_p2 = pnand %p270_p1, %p267_p0 }
   0x7   :  { %275 = shalt.err (!%p272_p2)
}
   0x8   :  { %s276_s18 = scalar_lea.vmem %s17_s10, 4096  ;;  %p281_p4 = scmp.lt.s32.totalorder %s17_s10, %s17_s10 }
   0x9   :  { %p277_p3 = scmp.ne.s32.totalorder %s17_s10, %s276_s18  ;;  %p282_p5 = scmp.lt.s32.totalorder %s276_s18, %s276_s18 }
   0xb   :  { %p283_p6 = por %p282_p5, %p281_p4 }
   0xd   :  { %p284_p7 = pnand %p283_p6, %p277_p3 }
   0xf   :  { %287 = shalt.err (!%p284_p7)
}
  0x10   :  { %s315_s19 = smov 128   ;;  %s316_s20 = smov 8  }
  0x11   :  { %22 = dma.hbm_to_vmem [thread:$0]  %s366_s1, 4096, %s17_s10, [#allocation3], %s315_s19, %s315_s19, %s316_s20  }
  0x12   :  { %310 = dma.done.wait [#allocation3], 4096  }
  0x13   :  { %311 = vsyncadd [#allocation3], 4294963200  ;;  %v317_v0 = vmov 0   ;;  %v318_v1 = vmov 2   ;;  %v26_v2 = vld [vmem:[%s365_s0] sm:$0xff]  ;;  %v80_v4 = vld [vmem:[#allocation2 + $0x88] sm:$0xff]  ;;  %v27_v56 = vlaneseq }
  0x14   :  { %261 = vset.pattern.permute.xlu0 %v317_v0  ;;  %263 = vset.pattern.permute.xlu1 %v318_v1  ;;  %v79_v3 = vld [vmem:[#allocation2 + $0x80] sm:$0xff]  ;;  %v43_v5 = vadd.s32 128, %v26_v2  ;;  %v64_v8 = vld [vmem:[#allocation2 + $0x8] sm:$0xff]  ;;  %v81_v9 = vld [vmem:[#allocation2 + $0x90] sm:$0xff]  ;;  %v35_v10 = vadd.s32 64, %v26_v2  ;;  %v51_v18 = vadd.s32 192, %v26_v2 }
  0x15   :  { %31 = vperm.xlu0 %261, %v26_v2   ;;  %v220_v6 = vpack.c.bf16 %v80_v4, %v79_v3  ;;  %v63_v7 = vld [vmem:[#allocation2] sm:$0xff]  ;;  %v82_v12 = vld [vmem:[#allocation2 + $0x98] sm:$0xff]  ;;  %v65_v13 = vld [vmem:[#allocation2 + $0x10] sm:$0xff]  ;;  %v319_v20 = vmov 1   ;;  %v320_v26 = vmov 3   ;;  %v28_v57 = vand.u32 127, %v27_v56 }
  0x16   :  { %v222_v11 = vpack.c.bf16 %v64_v8, %v63_v7  ;;  %v66_v14 = vld [vmem:[#allocation2 + $0x18] sm:$0xff]  ;;  %45 = vperm.xlu1 %263, %v43_v5   ;;  %v224_v15 = vpack.c.bf16 %v82_v12, %v81_v9  ;;  %v83_v16 = vld [vmem:[#allocation2 + $0xa0] sm:$0xff]  ;;  %v84_v17 = vld [vmem:[#allocation2 + $0xa8] sm:$0xff]  ;;  %v321_v63 = vmov 1.0   ;;  %s322_s0 = smov [#allocation5]  }
  0x17   :  { %221 = vmatprep.subr.bf16.mxu0 %v220_v6  ;;  %v226_v19 = vpack.c.bf16 %v66_v14, %v65_v13  ;;  %v228_v21 = vpack.c.bf16 %v84_v17, %v83_v16  ;;  %v67_v22 = vld [vmem:[#allocation2 + $0x20] sm:$0xff]  ;;  %v68_v23 = vld [vmem:[#allocation2 + $0x28] sm:$0xff]  ;;  %v85_v24 = vld [vmem:[#allocation2 + $0xb0] sm:$0xff]  ;;  %v29_v60 = vadd.s32 128, %v28_v57  ;;  %s172_s1 = sshll.u32 %s322_s0, 4  ;;  %s173_s1 = int_to_ptr.vmem [resolvable:$true] %s172_s1 }
  0x18   :  { %223 = vmatpush3.bf16.msra.mxu0 %v222_v11  ;;  %v86_v25 = vld [vmem:[#allocation2 + $0xb8] sm:$0xff]  ;;  %v230_v27 = vpack.c.bf16 %v68_v23, %v67_v22  ;;  %v69_v29 = vld [vmem:[#allocation2 + $0x30] sm:$0xff]  ;;  %v87_v31 = vld [vmem:[#allocation2 + $0xc0] sm:$0xff]  ;;  %s288_s25 = scalar_lea.vmem %s173_s1, 128  ;;  %p293_p9 = scmp.lt.s32.totalorder %s173_s1, %s173_s1 }
  0x19   :  { %262 = vset.pattern.permute.xlu0 %v319_v20  ;;  %225 = vmatprep.subr.bf16.mxu0 %v224_v15  ;;  %v232_v28 = vpack.c.bf16 %v86_v25, %v85_v24  ;;  %v70_v30 = vld [vmem:[#allocation2 + $0x38] sm:$0xff]  ;;  %v88_v32 = vld [vmem:[#allocation2 + $0xc8] sm:$0xff]  ;;  %v71_v35 = vld [vmem:[#allocation2 + $0x40] sm:$0xff]  ;;  %p289_p8 = scmp.ne.s32.totalorder %s173_s1, %s288_s25  ;;  %p294_p10 = scmp.lt.s32.totalorder %s288_s25, %s288_s25 }
  0x1a   :  { %37 = vperm.xlu0 %262, %v35_v10   ;;  %264 = vset.pattern.permute.xlu1 %v320_v26  ;;  %v234_v33 = vpack.c.bf16 %v70_v30, %v69_v29  ;;  %v236_v34 = vpack.c.bf16 %v88_v32, %v87_v31  ;;  %v72_v36 = vld [vmem:[#allocation2 + $0x48] sm:$0xff]  ;;  %v89_v37 = vld [vmem:[#allocation2 + $0xd0] sm:$0xff]  ;;  %v90_v38 = vld [vmem:[#allocation2 + $0xd8] sm:$0xff] }
  0x1b   :  { %53 = vperm.xlu1 %264, %v51_v18   ;;  %v238_v39 = vpack.c.bf16 %v72_v36, %v71_v35  ;;  %v240_v40 = vpack.c.bf16 %v90_v38, %v89_v37  ;;  %v73_v41 = vld [vmem:[#allocation2 + $0x50] sm:$0xff]  ;;  %v74_v42 = vld [vmem:[#allocation2 + $0x58] sm:$0xff]  ;;  %v91_v43 = vld [vmem:[#allocation2 + $0xe0] sm:$0xff]  ;;  %p295_p11 = por %p294_p10, %p293_p9 }
  0x1c   :  { %227 = vmatpush3.bf16.msra.mxu0 %v226_v19  ;;  %v92_v44 = vld [vmem:[#allocation2 + $0xe8] sm:$0xff]  ;;  %v242_v45 = vpack.c.bf16 %v74_v42, %v73_v41  ;;  %v75_v47 = vld [vmem:[#allocation2 + $0x60] sm:$0xff]  ;;  %v93_v49 = vld [vmem:[#allocation2 + $0xf0] sm:$0xff] }
  0x1d   :  { %229 = vmatprep.subr.bf16.mxu0 %v228_v21  ;;  %v244_v46 = vpack.c.bf16 %v92_v44, %v91_v43  ;;  %v76_v48 = vld [vmem:[#allocation2 + $0x68] sm:$0xff]  ;;  %v94_v50 = vld [vmem:[#allocation2 + $0xf8] sm:$0xff]  ;;  %v77_v53 = vld [vmem:[#allocation2 + $0x70] sm:$0xff]  ;;  %p296_p12 = pnand %p295_p11, %p289_p8 }
  0x1e   :  { %265 = vset.pattern.permute.xlu0 %v320_v26  ;;  %v246_v51 = vpack.c.bf16 %v76_v48, %v75_v47  ;;  %v248_v52 = vpack.c.bf16 %v94_v50, %v93_v49  ;;  %v78_v54 = vld [vmem:[#allocation2 + $0x78] sm:$0xff] }
  0x1f   :  { %v250_v55 = vpack.c.bf16 %v78_v54, %v77_v53 }
  0x20   :  { %231 = vmatpush3.bf16.msra.mxu0 %v230_v27 }
  0x21   :  { %233 = vmatprep.subr.bf16.mxu0 %v232_v28 }
  0x24   :  { %235 = vmatpush3.bf16.msra.mxu0 %v234_v33 }
  0x25   :  { %237 = vmatprep.subr.bf16.mxu0 %v236_v34 }
  0x28   :  { %239 = vmatpush3.bf16.msra.mxu0 %v238_v39 }
  0x29   :  { %241 = vmatprep.subr.bf16.mxu0 %v240_v40 }
  0x2c   :  { %243 = vmatpush3.bf16.msra.mxu0 %v242_v45 }
  0x2d   :  { %245 = vmatprep.subr.bf16.mxu0 %v244_v46 }
  0x30   :  { %247 = vmatpush3.bf16.msra.mxu0 %v246_v51 }
  0x31   :  { %249 = vmatprep.subr.bf16.mxu0 %v248_v52 }
  0x34   :  { %251 = vmatpush3.bf16.msra.mxu0 %v250_v55 }
  0x94   :  { %v32_v58 = vpop.permute.xlu0 %31 }
  0x95   :  { %v46_v59 = vpop.permute.xlu1 %45  ;;  %vm33_vm0 = vcmp.eq.s32.totalorder %v28_v57, %v32_v58  ;;  %vm34_vm3 = vcmp.eq.s32.totalorder %v29_v60, %v32_v58 }
  0x96   :  { %vm47_vm5 = vcmp.eq.s32.totalorder %v28_v57, %v46_v59  ;;  %vm48_vm10 = vcmp.eq.s32.totalorder %v29_v60, %v46_v59 }
  0x99   :  { %v38_v61 = vpop.permute.xlu0 %37 }
  0x9a   :  { %vm39_vm1 = vcmp.eq.s32.totalorder %v28_v57, %v38_v61  ;;  %vm40_vm2 = vcmp.eq.s32.totalorder %v29_v60, %v38_v61  ;;  %v54_v62 = vpop.permute.xlu1 %53 }
  0x9b   :  { %vm41_vm4 = vmor %vm33_vm0, %vm39_vm1  ;;  %vm55_vm7 = vcmp.eq.s32.totalorder %v28_v57, %v54_v62  ;;  %vm56_vm9 = vcmp.eq.s32.totalorder %v29_v60, %v54_v62 }
  0x9c   :  { %vm42_vm6 = vmor %vm34_vm3, %vm40_vm2 }
  0x9d   :  { %vm49_vm8 = vmor %vm41_vm4, %vm47_vm5 }
  0x9e   :  { %vm57_vm11 = vmor %vm49_vm8, %vm55_vm7 }
  0x9f   :  { %vm50_vm12 = vmor %vm42_vm6, %vm48_vm10 }
  0xa0   :  { %vm58_vm13 = vmor %vm50_vm12, %vm56_vm9 }
  0xa1   :  { %183 = vmatprep.mubr.msk.f32.mxu0 %vm58_vm13, %v321_v63 }
  0xa2   :  { %184 = vmatmul.mubr.msk.f32.vlgmr.msra.gmra.mrb[0].mxu0 %vm57_vm11, %v321_v63 }
 0x175   :  { %v217_v0 = vpop.f32.mrb[0].mxu0 }
 0x176   :  { %v218_v1 = vpop.f32.mrb[1].mxu0 }
 0x177   :  { %v219_v2 = vadd.f32 %v218_v1, %v217_v0 }
 0x179   :  { %165 = vst [vmem:[#allocation5] sm:$0xff] %v219_v2 }
 0x17a   :  { %299 = shalt.err (!%p296_p12)
}
 0x17b   :  { %s300_s28 = scalar_lea.hbm %s367_s2, 128 }
 0x17c   :  { %p301_p13 = scmp.ne.s32.totalorder %s367_s2, %s300_s28  ;;  %p304_p0 = scmp.lt.u32.totalorder %s300_s28, %s367_s2 }
 0x17e   :  { %p306_p1 = pnand %p304_p0, %p301_p13 }
 0x180   :  { %309 = shalt.err (!%p306_p1)
}
 0x181   :  { %175 = dma.vmem_to_hbm [thread:$0]  %s173_s1, 128, %s367_s2, [#allocation4]  }
 0x182   :  { %312 = dma.done.wait [#allocation4], 128  }
 0x183   :  { %313 = vsyncadd [#allocation4], 4294967168 }
 0x184   :  { %179 = vsyncpa [#allocation3], 1 }
 0x185   :  { %180 = vsyncpa [#allocation4], 1 }

</bundles_post_ra>
